<compile_context>
chip_gen: v5e
topology: v5e:2x2
jax: 0.10.0
libtpu: 0.0.40
codegen_flags: <defaults>
</compile_context>

<pallas_src>
import numpy as np
import jax
import jax.numpy as jnp
from jax.experimental import pallas as pl
from jax.experimental.pallas import tpu as pltpu

# ---------------- static configuration (small, deterministic shapes) -----------------
FUTURE_WINDOW_SIZE = 2
ESTIMATION_WINDOW_SIZE = 6
ONLINE_WINDOW_SIZE = FUTURE_WINDOW_SIZE + ESTIMATION_WINDOW_SIZE   # 8 frames
NUM_OF_JOINTS = 16
HIP_INDEX = 0

# simple 16-joint skeleton tree -> 15 bones
BONE_CONNECTIONS = np.array(
    [(0, 1), (1, 2), (2, 3),
     (0, 4), (4, 5), (5, 6),
     (0, 7), (7, 8), (8, 9), (9, 10),
     (8, 11), (11, 12),
     (8, 13), (13, 14), (14, 15)], dtype=np.int32)
NUM_OF_BONES = BONE_CONNECTIONS.shape[0]

_F = FUTURE_WINDOW_SIZE
_E = ESTIMATION_WINDOW_SIZE
_J = NUM_OF_JOINTS

# normalization constants, exactly as the PyTorch forward computes them
BONE_N = ESTIMATION_WINDOW_SIZE * ESTIMATION_WINDOW_SIZE   # E * length_of_bone.shape[0]
SMOOTH_N = ESTIMATION_WINDOW_SIZE * NUM_OF_JOINTS
LIFT_N = ESTIMATION_WINDOW_SIZE * NUM_OF_JOINTS


# ------------------------------------ kernel ----------------------------------------
def _pose3d_energy_kernel(w_ref, pose_ref, ja_ref, jb_ref, blen_ref, lift_ref, out_ref):
    # w_ref:    SMEM (3,)  [w_bone, w_smooth, w_lift]
    # pose_ref: VMEM (W, 3, J)
    # ja_ref:   VMEM (E, 3, B)  bone endpoint a (gathered in wrapper)
    # jb_ref:   VMEM (E, 3, B)  bone endpoint b
    # blen_ref: VMEM (E, B)     target (squared) bone lengths
    # lift_ref: VMEM (E, 3, J)  lift directions
    # out_ref:  SMEM (4,)  [overall, bone, smooth, lift]
    pose = pose_ref[...]                                   # (W, 3, J)

    # --- bone term (calculate_bone_lengths, 'no_sqrt', batch=True) ---
    bone_vec = ja_ref[...] - jb_ref[...]                   # (E, 3, B)
    length_of_bone = jnp.sum(bone_vec * bone_vec, axis=1)  # (E, B)
    d_bone = length_of_bone - blen_ref[...]
    bone_loss = jnp.sum(d_bone * d_bone) * (1.0 / BONE_N)

    # --- smoothness term ('velocity' mode: acceleration MSE) ---
    vel = pose[_F + 1:] - pose[_F:-1]                      # (E-1, 3, J)
    acc = vel[1:] - vel[:-1]                               # (E-2, 3, J)
    smooth_loss = jnp.sum(acc * acc) * (1.0 / SMOOTH_N)

    # --- lift term ('simple' method: hip-relative directions) ---
    pose_win = pose[_F:]                                   # (E, 3, J)
    hip = pose_win[:, :, HIP_INDEX:HIP_INDEX + 1]          # (E, 3, 1)
    pose_est_direction = pose_win - hip                    # broadcast along lanes
    d_lift = lift_ref[...] - pose_est_direction
    lift_loss = jnp.sum(d_lift * d_lift) * (1.0 / LIFT_N)

    overall = (w_ref[0] * bone_loss
               + w_ref[1] * smooth_loss
               + w_ref[2] * lift_loss)

    out_ref[0] = overall
    out_ref[1] = bone_loss
    out_ref[2] = smooth_loss
    out_ref[3] = lift_loss


# ------------------------------------ wrapper ----------------------------------------
@jax.jit
def pose3d_online_forward(pose3d, batch_bone_lengths, pose3d_lift_directions,
                          energy_weights):
    """Mirrors pose3d_online_parallel.forward() for the config above.

    pose3d:                 (ONLINE_WINDOW_SIZE, 3, NUM_OF_JOINTS) f32
    batch_bone_lengths:     (ONLINE_WINDOW_SIZE, NUM_OF_BONES) f32
    pose3d_lift_directions: (ESTIMATION_WINDOW_SIZE, 3, NUM_OF_JOINTS) f32
    energy_weights:         (3,) f32  [w_bone, w_smooth, w_lift]
    Returns dict with 'overall', 'bone', 'smooth', 'lift' scalars.
    """
    # static bone-connection gather: layout plumbing only, fused by XLA under jit
    pose_win = pose3d[FUTURE_WINDOW_SIZE:]
    joints_a = pose_win[:, :, BONE_CONNECTIONS[:, 0]]      # (E, 3, B)
    joints_b = pose_win[:, :, BONE_CONNECTIONS[:, 1]]      # (E, 3, B)
    compare_bone_len = batch_bone_lengths[FUTURE_WINDOW_SIZE:]  # (E, B)

    out = pl.pallas_call(
        _pose3d_energy_kernel,
        out_shape=jax.ShapeDtypeStruct((4,), jnp.float32),
        in_specs=[
            pl.BlockSpec(memory_space=pltpu.MemorySpace.SMEM),   # energy weights
            pl.BlockSpec(memory_space=pltpu.MemorySpace.VMEM),   # pose3d
            pl.BlockSpec(memory_space=pltpu.MemorySpace.VMEM),   # joints_a
            pl.BlockSpec(memory_space=pltpu.MemorySpace.VMEM),   # joints_b
            pl.BlockSpec(memory_space=pltpu.MemorySpace.VMEM),   # compare bone lengths
            pl.BlockSpec(memory_space=pltpu.MemorySpace.VMEM),   # lift directions
        ],
        out_specs=pl.BlockSpec(memory_space=pltpu.MemorySpace.SMEM),
    )(energy_weights, pose3d, joints_a, joints_b, compare_bone_len,
      pose3d_lift_directions)

    return {'overall': out[0], 'bone': out[1], 'smooth': out[2], 'lift': out[3]}


# --------------------------- pure-JAX reference (spec mirror) ------------------------
def pose3d_online_forward_ref(pose3d, batch_bone_lengths, pose3d_lift_directions,
                              energy_weights):
    F, E, J = FUTURE_WINDOW_SIZE, ESTIMATION_WINDOW_SIZE, NUM_OF_JOINTS
    pose_win = pose3d[F:]
    d = pose_win[:, :, BONE_CONNECTIONS[:, 0]] - pose_win[:, :, BONE_CONNECTIONS[:, 1]]
    length_of_bone = jnp.sum(d * d, axis=1)
    bone = jnp.sum((length_of_bone - batch_bone_lengths[F:]) ** 2) / (E * length_of_bone.shape[0])
    vel = pose3d[F + 1:] - pose3d[F:-1]
    smooth = jnp.sum((vel[1:] - vel[:-1]) ** 2) / (E * J)
    direction = pose_win - pose_win[:, :, HIP_INDEX:HIP_INDEX + 1]
    lift = jnp.sum((pose3d_lift_directions - direction) ** 2) / (E * J)
    overall = (energy_weights[0] * bone + energy_weights[1] * smooth
               + energy_weights[2] * lift)
    return {'overall': overall, 'bone': bone, 'smooth': smooth, 'lift': lift}


# -------------------------------------- main -----------------------------------------
if __name__ == "__main__":
    key = jax.random.PRNGKey(0)
    k_pose, k_gt, k_lift = jax.random.split(key, 3)

    # learnable 3D pose trajectory (the nn.Parameter), init via "init_pose3d"
    pose3d = jax.random.normal(k_pose, (ONLINE_WINDOW_SIZE, 3, NUM_OF_JOINTS),
                               dtype=jnp.float32)

    # target (squared) bone lengths, as pose_client.batch_bone_lengths would supply
    gt_pose = jax.random.normal(k_gt, (ONLINE_WINDOW_SIZE, 3, NUM_OF_JOINTS),
                                dtype=jnp.float32)
    gd = gt_pose[:, :, BONE_CONNECTIONS[:, 0]] - gt_pose[:, :, BONE_CONNECTIONS[:, 1]]
    batch_bone_lengths = jnp.sum(gd * gd, axis=1)          # (W, B)

    # lift_client.pose3d_lift_directions: hip-relative directions of a noisy pose
    lift_pose = jax.random.normal(k_lift, (ESTIMATION_WINDOW_SIZE, 3, NUM_OF_JOINTS),
                                  dtype=jnp.float32)
    pose3d_lift_directions = lift_pose - lift_pose[:, :, HIP_INDEX:HIP_INDEX + 1]

    # energy_weights for ('bone', 'smooth', 'lift')
    energy_weights = jnp.array([1.0, 0.5, 0.1], dtype=jnp.float32)

    out = pose3d_online_forward(pose3d, batch_bone_lengths, pose3d_lift_directions,
                                energy_weights)
    out = jax.block_until_ready(out)

    ref = pose3d_online_forward_ref(pose3d, batch_bone_lengths,
                                    pose3d_lift_directions, energy_weights)
    for name in ('overall', 'bone', 'smooth', 'lift'):
        assert jnp.allclose(out[name], ref[name], rtol=1e-5, atol=1e-6), \
            (name, out[name], ref[name])

    print("KERNEL_OK")
</pallas_src>

<mosaic_0001>
module attributes {stable_mosaic.version = 11 : i64} {
  func.func @_pose3d_energy_kernel(%arg0: memref<3xf32, #tpu.memory_space<smem>>, %arg1: memref<8x3x16xf32, #tpu.memory_space<vmem>>, %arg2: memref<6x3x15xf32, #tpu.memory_space<vmem>>, %arg3: memref<6x3x15xf32, #tpu.memory_space<vmem>>, %arg4: memref<6x15xf32, #tpu.memory_space<vmem>>, %arg5: memref<6x3x16xf32, #tpu.memory_space<vmem>>, %arg6: memref<4xf32, #tpu.memory_space<smem>>) attributes {dimension_semantics = [], scalar_prefetch = 0 : i64, scratch_operands = 0 : i64, tpu.core_type = #tpu.core_type<tc>} {
    %c0 = arith.constant 0 : index
    %c0_0 = arith.constant 0 : index
    %c0_1 = arith.constant 0 : index
    %0 = vector.load %arg1[%c0, %c0_0, %c0_1] : memref<8x3x16xf32, #tpu.memory_space<vmem>>, vector<8x3x16xf32>
    %c0_2 = arith.constant 0 : index
    %c0_3 = arith.constant 0 : index
    %c0_4 = arith.constant 0 : index
    %1 = vector.load %arg2[%c0_2, %c0_3, %c0_4] : memref<6x3x15xf32, #tpu.memory_space<vmem>>, vector<6x3x15xf32>
    %c0_5 = arith.constant 0 : index
    %c0_6 = arith.constant 0 : index
    %c0_7 = arith.constant 0 : index
    %2 = vector.load %arg3[%c0_5, %c0_6, %c0_7] : memref<6x3x15xf32, #tpu.memory_space<vmem>>, vector<6x3x15xf32>
    %3 = arith.subf %1, %2 : vector<6x3x15xf32>
    %4 = arith.mulf %3, %3 : vector<6x3x15xf32>
    %cst = arith.constant dense<0.000000e+00> : vector<6x15xf32>
    %5 = vector.multi_reduction <add>, %4, %cst [1] : vector<6x3x15xf32> to vector<6x15xf32>
    %c0_8 = arith.constant 0 : index
    %c0_9 = arith.constant 0 : index
    %6 = vector.load %arg4[%c0_8, %c0_9] : memref<6x15xf32, #tpu.memory_space<vmem>>, vector<6x15xf32>
    %7 = arith.subf %5, %6 : vector<6x15xf32>
    %8 = arith.mulf %7, %7 : vector<6x15xf32>
    %9 = vector.shape_cast %8 : vector<6x15xf32> to vector<1x6x15xf32>
    %cst_10 = arith.constant dense<0.000000e+00> : vector<1xf32>
    %10 = vector.multi_reduction <add>, %9, %cst_10 [1, 2] : vector<1x6x15xf32> to vector<1xf32>
    %11 = vector.shape_cast %10 : vector<1xf32> to vector<1x1x1xf32>
    %12 = vector.extract %11[0, 0, 0] : f32 from vector<1x1x1xf32>
    %cst_11 = arith.constant 0.027777778 : f32
    %13 = arith.mulf %12, %cst_11 : f32
    %14 = vector.extract_strided_slice %0 {offsets = [3, 0, 0], sizes = [5, 3, 16], strides = [1, 1, 1]} : vector<8x3x16xf32> to vector<5x3x16xf32>
    %15 = vector.extract_strided_slice %0 {offsets = [2, 0, 0], sizes = [5, 3, 16], strides = [1, 1, 1]} : vector<8x3x16xf32> to vector<5x3x16xf32>
    %16 = arith.subf %14, %15 : vector<5x3x16xf32>
    %17 = vector.extract_strided_slice %16 {offsets = [1, 0, 0], sizes = [4, 3, 16], strides = [1, 1, 1]} : vector<5x3x16xf32> to vector<4x3x16xf32>
    %18 = vector.extract_strided_slice %16 {offsets = [0, 0, 0], sizes = [4, 3, 16], strides = [1, 1, 1]} : vector<5x3x16xf32> to vector<4x3x16xf32>
    %19 = arith.subf %17, %18 : vector<4x3x16xf32>
    %20 = arith.mulf %19, %19 : vector<4x3x16xf32>
    %21 = vector.shape_cast %20 : vector<4x3x16xf32> to vector<1x4x3x16xf32>
    %cst_12 = arith.constant dense<0.000000e+00> : vector<1xf32>
    %22 = vector.multi_reduction <add>, %21, %cst_12 [1, 2, 3] : vector<1x4x3x16xf32> to vector<1xf32>
    %23 = vector.shape_cast %22 : vector<1xf32> to vector<1x1x1x1xf32>
    %24 = vector.extract %23[0, 0, 0, 0] : f32 from vector<1x1x1x1xf32>
    %cst_13 = arith.constant 0.010416667 : f32
    %25 = arith.mulf %24, %cst_13 : f32
    %26 = vector.extract_strided_slice %0 {offsets = [2, 0, 0], sizes = [6, 3, 16], strides = [1, 1, 1]} : vector<8x3x16xf32> to vector<6x3x16xf32>
    %27 = vector.extract_strided_slice %26 {offsets = [0, 0, 0], sizes = [6, 3, 1], strides = [1, 1, 1]} : vector<6x3x16xf32> to vector<6x3x1xf32>
    %28 = vector.broadcast %27 : vector<6x3x1xf32> to vector<6x3x16xf32>
    %29 = arith.subf %26, %28 : vector<6x3x16xf32>
    %c0_14 = arith.constant 0 : index
    %c0_15 = arith.constant 0 : index
    %c0_16 = arith.constant 0 : index
    %30 = vector.load %arg5[%c0_14, %c0_15, %c0_16] : memref<6x3x16xf32, #tpu.memory_space<vmem>>, vector<6x3x16xf32>
    %31 = arith.subf %30, %29 : vector<6x3x16xf32>
    %32 = arith.mulf %31, %31 : vector<6x3x16xf32>
    %33 = vector.shape_cast %32 : vector<6x3x16xf32> to vector<1x6x3x16xf32>
    %cst_17 = arith.constant dense<0.000000e+00> : vector<1xf32>
    %34 = vector.multi_reduction <add>, %33, %cst_17 [1, 2, 3] : vector<1x6x3x16xf32> to vector<1xf32>
    %35 = vector.shape_cast %34 : vector<1xf32> to vector<1x1x1x1xf32>
    %36 = vector.extract %35[0, 0, 0, 0] : f32 from vector<1x1x1x1xf32>
    %cst_18 = arith.constant 0.010416667 : f32
    %37 = arith.mulf %36, %cst_18 : f32
    %c0_19 = arith.constant 0 : index
    %38 = memref.load %arg0[%c0_19] : memref<3xf32, #tpu.memory_space<smem>>
    %39 = arith.mulf %38, %13 : f32
    %c1 = arith.constant 1 : index
    %40 = memref.load %arg0[%c1] : memref<3xf32, #tpu.memory_space<smem>>
    %41 = arith.mulf %40, %25 : f32
    %42 = arith.addf %39, %41 : f32
    %c2 = arith.constant 2 : index
    %43 = memref.load %arg0[%c2] : memref<3xf32, #tpu.memory_space<smem>>
    %44 = arith.mulf %43, %37 : f32
    %45 = arith.addf %42, %44 : f32
    %c0_20 = arith.constant 0 : index
    %46 = memref.load %arg6[%c0_20] : memref<4xf32, #tpu.memory_space<smem>>
    memref.store %45, %arg6[%c0_20] : memref<4xf32, #tpu.memory_space<smem>>
    %c1_21 = arith.constant 1 : index
    %47 = memref.load %arg6[%c1_21] : memref<4xf32, #tpu.memory_space<smem>>
    memref.store %13, %arg6[%c1_21] : memref<4xf32, #tpu.memory_space<smem>>
    %c2_22 = arith.constant 2 : index
    %48 = memref.load %arg6[%c2_22] : memref<4xf32, #tpu.memory_space<smem>>
    memref.store %25, %arg6[%c2_22] : memref<4xf32, #tpu.memory_space<smem>>
    %c3 = arith.constant 3 : index
    %49 = memref.load %arg6[%c3] : memref<4xf32, #tpu.memory_space<smem>>
    memref.store %37, %arg6[%c3] : memref<4xf32, #tpu.memory_space<smem>>
    return
  }
}

</mosaic_0001>

<bundles_post_ra>
// kernel: pose3d_online_forward.1
= control target key start
LH: loop header
LB: loop body
LE: loop exit
PB: predicated region body
PF: predicated region fallthrough
CT: control target
= control target key end

     0   :  { %11 = vsyncpa [#allocation3], 0  ;;  %s518_s0 = inlined_call_operand.vmem [shape: f32[3], index: 0, kind: input, shape index: {}]   ;;  %s519_s1 = inlined_call_operand.vmem [shape: f32[8,3,16], index: 1, kind: input, shape index: {}]   ;;  %s520_s2 = inlined_call_operand.vmem [shape: f32[6,3,15], index: 2, kind: input, shape index: {}]   ;;  %s521_s3 = inlined_call_operand.vmem [shape: f32[6,3,15], index: 3, kind: input, shape index: {}]   ;;  %s522_s4 = inlined_call_operand.vmem [shape: f32[6,15], index: 4, kind: input, shape index: {}]   ;;  %s523_s5 = inlined_call_operand.vmem [shape: f32[6,3,16], index: 5, kind: input, shape index: {}]   ;;  %s524_s6 = inlined_call_operand.vmem [shape: f32[4], index: 6, kind: output, shape index: {}]  }
   0x1   :  { %12 = vsyncpa [#allocation4], 0  ;;  %s18_s23 = sshll.u32 %s518_s0, 4  ;;  %s349_s24 = smov [#allocation2]   ;;  %s19_s23 = int_to_ptr.vmem [resolvable:$true] %s18_s23 }
   0x2   :  { %21 = dma.vmem_to_smem %s19_s23, 16, %s349_s24, [#allocation3]  }
   0x3   :  { %345 = dma.done.wait [#allocation3], 16  }
   0x4   :  { %346 = vsyncadd [#allocation3], 4294967280 }
   0x5   :  { %36 = sfence }
   0x6   :  { %v393_v0 = vld [vmem:[%s519_s1 + $0x10] sm:$0x7]  ;;  %v398_v1 = vld [vmem:[%s519_s1 + $0x8] sm:$0x7]  ;;  %v350_v2 = vmov 0   ;;  %vm67_vm0 = vcmask 116736  }
   0x7   :  { %319 = vset.pattern.permute.xlu1 %v350_v2  ;;  %318 = vset.pattern.permute.xlu0 %v350_v2  ;;  %v403_v3 = vld [vmem:[%s519_s1 + $0x18] sm:$0x7]  ;;  %v411_v4 = vld [vmem:[%s519_s1 + $0x14] sm:$0x7]  ;;  %v416_v5 = vld [vmem:[%s519_s1 + $0xc] sm:$0x7] }
   0x8   :  { %212 = vperm.xlu1 %319, %v393_v0   ;;  %202 = vperm.xlu0 %318, %v398_v1   ;;  %v421_v6 = vld [vmem:[%s519_s1 + $0x1c] sm:$0x7]  ;;  %v44_v7 = vld [vmem:[%s520_s2 + $0x4] sm:$0x7]  ;;  %v45_v9 = vld [vmem:[%s520_s2 + $0x8] sm:$0x7]  ;;  %v171_v53 = vsub.f32 %v411_v4, %v393_v0  ;;  %v170_v57 = vsub.f32 %v393_v0, %v416_v5  ;;  %v169_v61 = vsub.f32 %v416_v5, %v398_v1 }
   0x9   :  { %320 = vset.pattern.permute.xlu2 %v350_v2  ;;  %v50_v8 = vld [vmem:[%s521_s3 + $0x4] sm:$0x7]  ;;  %v51_v10 = vld [vmem:[%s521_s3 + $0x8] sm:$0x7]  ;;  %v43_v12 = vld [vmem:[%s520_s2] sm:$0x7] }
   0xa   :  { %222 = vperm.xlu2 %320, %v403_v3   ;;  %v56_v11 = vsub.f32 %v44_v7, %v50_v8  ;;  %v46_v13 = vld [vmem:[%s520_s2 + $0xc] sm:$0x7]  ;;  %v49_v14 = vld [vmem:[%s521_s3] sm:$0x7]  ;;  %v57_v15 = vsub.f32 %v45_v9, %v51_v10  ;;  %v47_v16 = vld [vmem:[%s520_s2 + $0x10] sm:$0x7] }
   0xb   :  { %v52_v17 = vld [vmem:[%s521_s3 + $0xc] sm:$0x7]  ;;  %v53_v18 = vld [vmem:[%s521_s3 + $0x10] sm:$0x7]  ;;  %v55_v19 = vsub.f32 %v43_v12, %v49_v14  ;;  %v48_v21 = vld [vmem:[%s520_s2 + $0x14] sm:$0x7] }
   0xc   :  { %v62_v20 = vmul.f32 %v56_v11, %v56_v11  ;;  %v54_v22 = vld [vmem:[%s521_s3 + $0x14] sm:$0x7]  ;;  %v58_v23 = vsub.f32 %v46_v13, %v52_v17  ;;  %v59_v24 = vsub.f32 %v47_v16, %v53_v18  ;;  %v63_v25 = vmul.f32 %v57_v15, %v57_v15  ;;  %v110_v7 = vld [vmem:[%s522_s4] sm:$0x3f]  ;;  %s275_s23 = sld [smem:[#allocation2]]  ;;  %s296_s7 = sshll.u32 %s524_s6, 4  ;;  %s297_s7 = int_to_ptr.vmem [resolvable:$true] %s296_s7 }
   0xd   :  { %v60_v26 = vsub.f32 %v48_v21, %v54_v22  ;;  %v61_v27 = vmul.f32 %v55_v19, %v55_v19  ;;  %v112_v11 = vrot.slane %v110_v7, 1  ;;  %v113_v15 = vrot.slane %v110_v7, 2  ;;  %s307_s24 = sld [smem:[#allocation2 + $0x1]]  ;;  %s351_s3 = smov [#allocation5]  }
   0xe   :  { %v75_v28 = vsel %vm67_vm0, %v62_v20, 0.0  ;;  %v64_v29 = vmul.f32 %v58_v23, %v58_v23  ;;  %v65_v30 = vmul.f32 %v59_v24, %v59_v24  ;;  %v82_v32 = vsel %vm67_vm0, %v63_v25, 0.0  ;;  %s308_s25 = sld [smem:[#allocation2 + $0x2]] }
   0xf   :  { %v76_v31 = vrot.slane %v75_v28, 4  ;;  %v66_v33 = vmul.f32 %v60_v26, %v60_v26  ;;  %v68_v34 = vsel %vm67_vm0, %v61_v27, 0.0  ;;  %v83_v35 = vrot.slane %v82_v32, 4 }
  0x10   :  { %217 = vperm.xlu1 %319, %v411_v4   ;;  %207 = vperm.xlu0 %318, %v416_v5   ;;  %v69_v36 = vrot.slane %v68_v34, 4  ;;  %v89_v38 = vsel %vm67_vm0, %v64_v29, 0.0  ;;  %v96_v39 = vsel %vm67_vm0, %v65_v30, 0.0  ;;  %v114_v18 = vrot.slane %v110_v7, 3 }
  0x11   :  { %v77_v37 = vadd.f32 %v76_v31, %v75_v28  ;;  %v84_v40 = vadd.f32 %v83_v35, %v82_v32  ;;  %v90_v41 = vrot.slane %v89_v38, 4  ;;  %v97_v42 = vrot.slane %v96_v39, 4 }
  0x12   :  { %227 = vperm.xlu2 %320, %v421_v6   ;;  %v103_v43 = vsel %vm67_vm0, %v66_v33, 0.0  ;;  %v70_v44 = vadd.f32 %v69_v36, %v68_v34  ;;  %v115_v22 = vrot.slane %v110_v7, 4  ;;  %v116_v25 = vrot.slane %v110_v7, 5 }
  0x13   :  { %v78_v45 = vrot.slane %v77_v37, 2  ;;  %v104_v46 = vrot.slane %v103_v43, 4  ;;  %v85_v47 = vrot.slane %v84_v40, 2  ;;  %v91_v48 = vadd.f32 %v90_v41, %v89_v38 }
  0x14   :  { %v98_v49 = vadd.f32 %v97_v42, %v96_v39  ;;  %v71_v50 = vrot.slane %v70_v44, 2  ;;  %v173_v28 = vsub.f32 %v421_v6, %v403_v3  ;;  %v172_v35 = vsub.f32 %v403_v3, %v411_v4 }
  0x15   :  { %v79_v51 = vadd.f32 %v78_v45, %v77_v37  ;;  %v105_v52 = vadd.f32 %v104_v46, %v103_v43  ;;  %v86_v54 = vadd.f32 %v85_v47, %v84_v40  ;;  %v92_v55 = vrot.slane %v91_v48, 2 }
  0x16   :  { %v99_v56 = vrot.slane %v98_v49, 2  ;;  %v72_v58 = vadd.f32 %v71_v50, %v70_v44  ;;  %vm142_vm1 = vcmask 1041409   ;;  %v174_v38 = vsub.f32 %v170_v57, %v169_v61 }
  0x17   :  { %v80_v59 = vrot.slane %v79_v51, 1  ;;  %v106_v60 = vrot.slane %v105_v52, 2  ;;  %v87_v62 = vrot.slane %v86_v54, 1  ;;  %v93_v63 = vadd.f32 %v92_v55, %v91_v48 }
  0x18   :  { %v100_v2 = vadd.f32 %v99_v56, %v98_v49  ;;  %v73_v8 = vrot.slane %v72_v58, 1  ;;  %vm145_vm2 = vcmask 1042434   ;;  %vm148_vm3 = vcmask 1043459  }
  0x19   :  { %v81_v9 = vadd.f32 %v80_v59, %v79_v51  ;;  %v107_v10 = vadd.f32 %v106_v60, %v105_v52  ;;  %v88_v12 = vadd.f32 %v87_v62, %v86_v54  ;;  %v94_v13 = vrot.slane %v93_v63, 1 }
  0x1a   :  { %v101_v14 = vrot.slane %v100_v2, 1  ;;  %v74_v16 = vadd.f32 %v73_v8, %v72_v58  ;;  %vm151_vm4 = vcmask 1044484   ;;  %v175_v46 = vsub.f32 %v171_v53, %v170_v57 }
  0x1b   :  { %v108_v17 = vrot.slane %v107_v10, 1  ;;  %v124_v19 = vsub.f32 %v81_v9, %v112_v11  ;;  %v95_v20 = vadd.f32 %v94_v13, %v93_v63  ;;  %v125_v23 = vsub.f32 %v88_v12, %v113_v15  ;;  %v238_v12 = vld [vmem:[%s523_s5 + $0x8] sm:$0x7]  ;;  %v239_v15 = vld [vmem:[%s523_s5 + $0xc] sm:$0x7] }
  0x1c   :  { %v102_v21 = vadd.f32 %v101_v14, %v100_v2  ;;  %v123_v26 = vsub.f32 %v74_v16, %v110_v7  ;;  %vm154_vm5 = vcmask 1045509   ;;  %v176_v48 = vsub.f32 %v172_v35, %v171_v53 }
  0x1d   :  { %v109_v24 = vadd.f32 %v108_v17, %v107_v10  ;;  %v130_v27 = vmul.f32 %v124_v19, %v124_v19  ;;  %v126_v29 = vsub.f32 %v95_v20, %v114_v18  ;;  %v131_v31 = vmul.f32 %v125_v23, %v125_v23  ;;  %v236_v10 = vld [vmem:[%s523_s5] sm:$0x7] }
  0x1e   :  { %v127_v30 = vsub.f32 %v102_v21, %v115_v22  ;;  %v129_v33 = vmul.f32 %v123_v26, %v123_v26  ;;  %vm157_vm6 = vcmask 119808   ;;  %v177_v50 = vsub.f32 %v173_v28, %v172_v35  ;;  %v240_v21 = vld [vmem:[%s523_s5 + $0x10] sm:$0x7]  ;;  %v241_v26 = vld [vmem:[%s523_s5 + $0x14] sm:$0x7] }
  0x1f   :  { %v128_v32 = vsub.f32 %v109_v24, %v116_v25  ;;  %v141_v34 = vrot.slane %v130_v27, 7  ;;  %v132_v36 = vmul.f32 %v126_v29, %v126_v29  ;;  %v144_v41 = vrot.slane %v131_v31, 6 }
  0x20   :  { %v133_v37 = vmul.f32 %v127_v30, %v127_v30  ;;  %v178_v51 = vmul.f32 %v174_v38, %v174_v38  ;;  %vm182_vm7 = vcmask 124928   ;;  %v179_v54 = vmul.f32 %v175_v46, %v175_v46 }
  0x21   :  { %v134_v39 = vmul.f32 %v128_v32, %v128_v32  ;;  %v143_v40 = vsel %vm142_vm1, %v141_v34, %v129_v33  ;;  %v147_v42 = vrot.slane %v132_v36, 5  ;;  %v180_v55 = vmul.f32 %v176_v48, %v176_v48 }
  0x22   :  { %v150_v43 = vrot.slane %v133_v37, 4  ;;  %v146_v44 = vsel %vm145_vm2, %v144_v41, %v143_v40  ;;  %v181_v58 = vmul.f32 %v177_v50, %v177_v50  ;;  %v183_v59 = vsel %vm182_vm7, %v178_v51, 0.0 }
  0x23   :  { %v153_v45 = vrot.slane %v134_v39, 3  ;;  %v149_v47 = vsel %vm148_vm3, %v147_v42, %v146_v44  ;;  %v184_v60 = vsel %vm182_vm7, %v179_v54, 0.0  ;;  %v186_v57 = vsel %vm182_vm7, %v180_v55, 0.0 }
  0x24   :  { %v152_v49 = vsel %vm151_vm4, %v150_v43, %v149_v47  ;;  %v185_v61 = vadd.f32 %v184_v60, %v183_v59  ;;  %v188_v53 = vsel %vm182_vm7, %v181_v58, 0.0 }
  0x25   :  { %v155_v52 = vsel %vm154_vm5, %v153_v45, %v152_v49 }
  0x26   :  { %v158_v56 = vsel %vm157_vm6, %v155_v52, 0.0  ;;  %v187_v62 = vadd.f32 %v186_v57, %v185_v61 }
  0x28   :  { %v189_v63 = vadd.f32 %v188_v53, %v187_v62 }
  0x3a   :  { %159 = vadd.xlane.f32.xlu0 %v158_v56  ;;  %190 = vadd.xlane.f32.xlu1 %v189_v63 }
  0x64   :  { %v223_v2 = vpop.permute.xlu2 %222 }
  0x65   :  { %v234_v18 = vsub.f32 %v403_v3, %v223_v2 }
  0x67   :  { %v246_v27 = vsub.f32 %v240_v21, %v234_v18 }
  0x69   :  { %v252_v32 = vmul.f32 %v246_v27, %v246_v27 }
  0x6b   :  { %v261_v37 = vsel %vm182_vm7, %v252_v32, 0.0 }
  0x6c   :  { %v228_v14 = vpop.permute.xlu2 %227 }
  0x6d   :  { %v235_v23 = vsub.f32 %v421_v6, %v228_v14 }
  0x6f   :  { %v247_v29 = vsub.f32 %v241_v26, %v235_v23 }
  0x71   :  { %v253_v34 = vmul.f32 %v247_v29, %v247_v29 }
  0x73   :  { %v263_v39 = vsel %vm182_vm7, %v253_v34, 0.0 }
  0x7a   :  { %v213_v7 = vpop.permute.xlu1 %212  ;;  %v203_v8 = vpop.permute.xlu0 %202 }
  0x7b   :  { %v230_v9 = vsub.f32 %v398_v1, %v203_v8  ;;  %v232_v11 = vsub.f32 %v393_v0, %v213_v7  ;;  %v237_v1 = vld [vmem:[%s523_s5 + $0x4] sm:$0x7] }
  0x7d   :  { %v242_v13 = vsub.f32 %v236_v10, %v230_v9  ;;  %v244_v19 = vsub.f32 %v238_v12, %v232_v11 }
  0x7f   :  { %v248_v22 = vmul.f32 %v242_v13, %v242_v13  ;;  %v250_v3 = vmul.f32 %v244_v19, %v244_v19 }
  0x81   :  { %v257_v33 = vsel %vm182_vm7, %v250_v3, 0.0 }
  0x82   :  { %v218_v16 = vpop.permute.xlu1 %217  ;;  %v208_v17 = vpop.permute.xlu0 %207 }
  0x83   :  { %v233_v0 = vsub.f32 %v411_v4, %v218_v16  ;;  %v231_v20 = vsub.f32 %v416_v5, %v208_v17  ;;  %v254_v4 = vsel %vm182_vm7, %v248_v22, 0.0 }
  0x85   :  { %v245_v24 = vsub.f32 %v239_v15, %v233_v0  ;;  %v243_v25 = vsub.f32 %v237_v1, %v231_v20 }
  0x87   :  { %v249_v28 = vmul.f32 %v243_v25, %v243_v25  ;;  %v251_v5 = vmul.f32 %v245_v24, %v245_v24 }
  0x89   :  { %v255_v30 = vsel %vm182_vm7, %v249_v28, 0.0  ;;  %v259_v35 = vsel %vm182_vm7, %v251_v5, 0.0 }
  0x8a   :  { %v256_v31 = vadd.f32 %v255_v30, %v254_v4 }
  0x8c   :  { %v258_v6 = vadd.f32 %v257_v33, %v256_v31 }
  0x8e   :  { %v260_v36 = vadd.f32 %v259_v35, %v258_v6 }
  0x90   :  { %v262_v38 = vadd.f32 %v261_v37, %v260_v36 }
  0x92   :  { %v264_v40 = vadd.f32 %v263_v39, %v262_v38 }
  0x94   :  { %265 = vadd.xlane.f32.xlu2 %v264_v40 }
  0xad   :  { %v160_v41 = vpop.xlane.xlu0 %159  ;;  %v191_v45 = vpop.xlane.xlu1 %190 }
  0xae   :  { %v161_v42 = vrot.slane %v160_v41, 4  ;;  %v192_v47 = vrot.slane %v191_v45, 4 }
  0xb0   :  { %v162_v43 = vadd.f32 %v161_v42, %v160_v41  ;;  %v193_v49 = vadd.f32 %v192_v47, %v191_v45 }
  0xb2   :  { %v163_v44 = vrot.slane %v162_v43, 2  ;;  %v194_v51 = vrot.slane %v193_v49, 2 }
  0xb4   :  { %v164_v46 = vadd.f32 %v163_v44, %v162_v43  ;;  %v195_v52 = vadd.f32 %v194_v51, %v193_v49 }
  0xb6   :  { %v165_v48 = vrot.slane %v164_v46, 1  ;;  %v196_v54 = vrot.slane %v195_v52, 1 }
  0xb8   :  { %v166_v50 = vadd.f32 %v165_v48, %v164_v46  ;;  %v197_v55 = vadd.f32 %v196_v54, %v195_v52 }
  0xba   :  { %309 = vpush %v166_v50 }
  0xbb   :  { %311 = vpush %v197_v55 }
  0xeb   :  { %s310_s5 = spop %309 }
  0xec   :  { %s168_s20 = smul.f32 0.027777778, %s310_s5  ;;  %s312_s21 = spop %311 }
  0xed   :  { %s199_s22 = smul.f32 0.010416667, %s312_s21 }
  0xee   :  { %286 = sst [smem:[#allocation5 + $0x1]] %s168_s20  ;;  %s276_s26 = smul.f32 %s275_s23, %s168_s20 }
  0xef   :  { %288 = sst [smem:[#allocation5 + $0x2]] %s199_s22  ;;  %s278_s27 = smul.f32 %s307_s24, %s199_s22 }
  0xf1   :  { %s279_s8 = sadd.f32 %s278_s27, %s276_s26 }
 0x107   :  { %v266_v56 = vpop.xlane.xlu2 %265 }
 0x108   :  { %v267_v58 = vrot.slane %v266_v56, 4 }
 0x10a   :  { %v268_v59 = vadd.f32 %v267_v58, %v266_v56 }
 0x10c   :  { %v269_v60 = vrot.slane %v268_v59, 2 }
 0x10e   :  { %v270_v57 = vadd.f32 %v269_v60, %v268_v59 }
 0x110   :  { %v271_v61 = vrot.slane %v270_v57, 1 }
 0x112   :  { %v272_v53 = vadd.f32 %v271_v61, %v270_v57 }
 0x114   :  { %313 = vpush %v272_v53 }
 0x145   :  { %s314_s28 = spop %313 }
 0x146   :  { %s274_s0 = smul.f32 0.010416667, %s314_s28 }
 0x148   :  { %s281_s9 = smul.f32 %s308_s25, %s274_s0  ;;  %290 = sst [smem:[#allocation5 + $0x3]] %s274_s0 }
 0x14a   :  { %s282_s2 = sadd.f32 %s281_s9, %s279_s8 }
 0x14c   :  { %284 = sst [smem:[#allocation5]] %s282_s2 }
 0x14d   :  { %299 = dma.smem_to_vmem %s351_s3, 16, %s297_s7, [#allocation4]  }
 0x14e   :  { %347 = dma.done.wait [#allocation4], 16  }
 0x14f   :  { %348 = vsyncadd [#allocation4], 4294967280 }
 0x150   :  { %304 = sfence }
 0x151   :  { %305 = vsyncpa [#allocation3], 1 }
 0x152   :  { %306 = vsyncpa [#allocation4], 1 }

</bundles_post_ra>
